<compile_context>
chip_gen: v5e
topology: v5e:2x2
jax: 0.10.0
libtpu: 0.0.40
codegen_flags: <defaults>
</compile_context>

<pallas_src>
import jax
import jax.numpy as jnp
from jax.experimental import pallas as pl
from jax.experimental.pallas import tpu as pltpu


# ------------------------------- Pallas kernel -------------------------------

def single_conv_kernel(x_ref, w_ref, b_ref, o_ref):
    # x_ref: (Cin,  TILE_HW) f32   activation tile (channels on sublanes, pixels on lanes)
    # w_ref: (Cout, Cin)     bf16  BN-folded 1x1 conv weight (resident across grid steps)
    # b_ref: (Cout, 1)       f32   BN-folded bias            (resident across grid steps)
    # o_ref: (Cout, TILE_HW)       lane-dense output tile
    y = jnp.dot(w_ref[...], x_ref[...].astype(jnp.bfloat16),     # 1x1 conv on MXU,
                preferred_element_type=jnp.float32)              # bf16 operands, f32 acc
    o_ref[...] = jnp.maximum(y + b_ref[...], 0.0).astype(o_ref.dtype)   # bias + ReLU
    # Dropout(p): identity in inference mode.


# --------------------------------- wrapper -----------------------------------

def _pick_tile_hw(hw, cin, cout, max_tile_hw, vmem_budget_bytes):
    """Largest lane-dense (multiple-of-128) pixel tile fitting the VMEM budget."""
    bytes_per_col = 2 * (cin + cout) * 4          # double-buffered f32 in + out columns
    cap = max(128, (vmem_budget_bytes // bytes_per_col) // 128 * 128)
    tile = min(hw, max_tile_hw, cap)
    if tile < hw:                                  # partial tiles must stay 128-aligned
        tile = max(128, (tile // 128) * 128)
    return tile


def single_conv_forward(params, x_nchw, *, max_tile_hw=8192,
                        vmem_budget_bytes=40 * 1024 * 1024,
                        out_dtype=jnp.float32):
    """SingleConv forward. x_nchw: (N, Cin, H, W) float32 -> (N, Cout, H, W) out_dtype."""
    n, cin, h, w = x_nchw.shape
    cout = params["w_fold_bf16"].shape[0]
    hw = h * w

    # Free metadata-only reshape: NCHW -> (N, Cin, H*W). Pixels land on the lane axis so
    # both loads and stores of every Pallas block are lane-dense.
    x3d = x_nchw.reshape(n, cin, hw)

    tile_hw = _pick_tile_hw(hw, cin, cout, max_tile_hw, vmem_budget_bytes)
    grid = (n, pl.cdiv(hw, tile_hw))

    out3d = pl.pallas_call(
        single_conv_kernel,
        out_shape=jax.ShapeDtypeStruct((n, cout, hw), out_dtype),
        grid_spec=pltpu.PrefetchScalarGridSpec(
            num_scalar_prefetch=0,
            grid=grid,
            in_specs=[
                pl.BlockSpec((pl.Squeezed(), cin, tile_hw),
                             lambda b, j: (b, 0, j)),            # activation tile
                pl.BlockSpec((cout, cin), lambda b, j: (0, 0)),  # folded weight (resident)
                pl.BlockSpec((cout, 1), lambda b, j: (0, 0)),    # folded bias   (resident)
            ],
            out_specs=pl.BlockSpec((pl.Squeezed(), cout, tile_hw),
                                   lambda b, j: (b, 0, j)),
        ),
        compiler_params=pltpu.CompilerParams(
            dimension_semantics=("parallel", "parallel"),   # megacore sharding on v7x
            vmem_limit_bytes=48 * 1024 * 1024,              # fits v5e/v6e (128 MiB) and v7x (64 MiB)
        ),
    )(x3d, params["w_fold_bf16"], params["b_fold"])

    return out3d.reshape(n, cout, h, w)                     # free reshape back to NCHW


# ------------------------- deterministic parameter init ----------------------

def _bn_scale_shift(key, c):
    """Eval-mode BatchNorm folded to per-channel scale/shift vectors."""
    k1, k2, k3, k4 = jax.random.split(key, 4)
    gamma = 1.0 + 0.1 * jax.random.normal(k1, (c,), jnp.float32)
    beta = 0.1 * jax.random.normal(k2, (c,), jnp.float32)
    mean = 0.1 * jax.random.normal(k3, (c,), jnp.float32)
    var = 1.0 + 0.1 * jax.random.uniform(k4, (c,), jnp.float32)
    scale = gamma * jax.lax.rsqrt(var + 1e-5)
    shift = beta - mean * scale
    return scale, shift


def init_single_conv(key, in_channels, out_channels, mid_channels=None, first_norm=True):
    if mid_channels is None:
        mid_channels = out_channels
    k1, k2, k3 = jax.random.split(key, 3)
    if first_norm:
        s_in, b_in = _bn_scale_shift(k1, in_channels)
    else:
        # first_norm=False branch: no leading BatchNorm -> identity fold.
        s_in = jnp.ones((in_channels,), jnp.float32)
        b_in = jnp.zeros((in_channels,), jnp.float32)
    bound = 1.0 / float(in_channels) ** 0.5          # Conv2d k=1 fan-in init
    w = jax.random.uniform(k2, (mid_channels, in_channels), jnp.float32, -bound, bound)
    s_out, b_out = _bn_scale_shift(k3, mid_channels)

    # Host-side fold of both BatchNorms into the conv:
    #   out = s_out * (W @ (s_in*x + b_in)) + b_out
    #       = (diag(s_out) @ W @ diag(s_in)) @ x  +  (s_out*(W @ b_in) + b_out)
    w_fold = (s_out[:, None] * w) * s_in[None, :]
    b_fold = s_out * (w @ b_in) + b_out
    return dict(
        w=w, s_in=s_in, b_in=b_in, s_out=s_out, b_out=b_out,           # unfolded (reference)
        w_fold_bf16=w_fold.astype(jnp.bfloat16),                       # kernel params
        b_fold=b_fold.reshape(mid_channels, 1).astype(jnp.float32),
    )


# --------------------------- pure-JAX reference check -------------------------

def single_conv_reference(params, x_nchw):
    cin = x_nchw.shape[1]
    x = x_nchw * params["s_in"].reshape(1, cin, 1, 1) + params["b_in"].reshape(1, cin, 1, 1)
    y = jnp.einsum("nchw,oc->nohw", x, params["w"])
    y = y * params["s_out"].reshape(1, -1, 1, 1) + params["b_out"].reshape(1, -1, 1, 1)
    return jnp.maximum(y, 0.0)


# ----------------------------------- main -------------------------------------

if __name__ == "__main__":
    key = jax.random.PRNGKey(0)
    kp, kx = jax.random.split(key)

    N, CIN, COUT, H, W = 2, 4, 32, 16, 16
    params = init_single_conv(kp, CIN, COUT)
    x = jax.random.normal(kx, (N, CIN, H, W), jnp.float32)   # NCHW like PyTorch

    fwd = jax.jit(single_conv_forward)
    out = fwd(params, x)
    jax.block_until_ready(out)

    assert out.shape == (N, COUT, H, W), out.shape
    assert bool(jnp.all(jnp.isfinite(out)))
    assert bool(jnp.all(out >= 0.0))                 # ReLU output is non-negative

    ref = single_conv_reference(params, x)
    max_err = float(jnp.max(jnp.abs(out - ref)))
    assert max_err < 5e-2, f"max abs error vs reference: {max_err}"

    print("KERNEL_OK")
</pallas_src>

<mosaic_0001>
module attributes {stable_mosaic.version = 11 : i64} {
  func.func @single_conv_kernel(%arg0: i32, %arg1: i32, %arg2: memref<1x4x256xf32, #tpu.memory_space<vmem>>, %arg3: memref<32x4xbf16, #tpu.memory_space<vmem>>, %arg4: memref<32x1xf32, #tpu.memory_space<vmem>>, %arg5: memref<1x32x256xf32, #tpu.memory_space<vmem>>) attributes {dimension_semantics = [#tpu.dimension_semantics<parallel>, #tpu.dimension_semantics<parallel>], iteration_bounds = array<i64: 2, 1>, scalar_prefetch = 0 : i64, scratch_operands = 0 : i64, tpu.core_type = #tpu.core_type<tc>, window_params = [{transform_indices = @transform_0, window_bounds = array<i64: 1, 4, 256>}, {pipeline_mode = #tpu.pipeline_mode<synchronous>, transform_indices = @transform_1, window_bounds = array<i64: 32, 4>}, {pipeline_mode = #tpu.pipeline_mode<synchronous>, transform_indices = @transform_2, window_bounds = array<i64: 32, 1>}, {transform_indices = @transform_3, window_bounds = array<i64: 1, 32, 256>}]} {
    %c0 = arith.constant 0 : index
    %c0_0 = arith.constant 0 : index
    %0 = vector.load %arg3[%c0, %c0_0] : memref<32x4xbf16, #tpu.memory_space<vmem>>, vector<32x4xbf16>
    %c0_1 = arith.constant 0 : index
    %c0_2 = arith.constant 0 : index
    %c0_3 = arith.constant 0 : index
    %1 = vector.load %arg2[%c0_1, %c0_2, %c0_3] : memref<1x4x256xf32, #tpu.memory_space<vmem>>, vector<1x4x256xf32>
    %2 = vector.shape_cast %1 : vector<1x4x256xf32> to vector<4x256xf32>
    %3 = arith.truncf %2 : vector<4x256xf32> to vector<4x256xbf16>
    %cst = arith.constant dense<0.000000e+00> : vector<32x256xf32>
    %4 = tpu.matmul %0, %3, %cst {dimension_numbers = #tpu.dot_dimension_numbers<[1], [0], [0], [1], [0, 0, 1, 1], [], []>} : vector<32x4xbf16>, vector<4x256xbf16>, vector<32x256xf32> -> vector<32x256xf32>
    %c0_4 = arith.constant 0 : index
    %c0_5 = arith.constant 0 : index
    %5 = vector.load %arg4[%c0_4, %c0_5] : memref<32x1xf32, #tpu.memory_space<vmem>>, vector<32x1xf32>
    %6 = vector.broadcast %5 : vector<32x1xf32> to vector<32x256xf32>
    %7 = arith.addf %4, %6 : vector<32x256xf32>
    %cst_6 = arith.constant 0.000000e+00 : f32
    %8 = vector.broadcast %cst_6 : f32 to vector<32x256xf32>
    %9 = arith.maximumf %7, %8 : vector<32x256xf32>
    %c0_7 = arith.constant 0 : index
    %c0_8 = arith.constant 0 : index
    %c0_9 = arith.constant 0 : index
    %10 = vector.load %arg5[%c0_7, %c0_8, %c0_9] : memref<1x32x256xf32, #tpu.memory_space<vmem>>, vector<1x32x256xf32>
    %11 = vector.shape_cast %10 : vector<1x32x256xf32> to vector<32x256xf32>
    %12 = vector.shape_cast %9 : vector<32x256xf32> to vector<1x32x256xf32>
    tpu.vector_store %arg5[%c0_7, %c0_8, %c0_9], %12 {strides = array<i32>} : memref<1x32x256xf32, #tpu.memory_space<vmem>>, vector<1x32x256xf32>,
    return
  }
  func.func @transform_0(%arg0: i32, %arg1: i32) -> (i32, i32, i32) {
    %c0_i32 = arith.constant 0 : i32
    %c0_i32_0 = arith.constant 0 : i32
    return %arg0, %c0_i32, %arg1 : i32, i32, i32
  }
  func.func @transform_1(%arg0: i32, %arg1: i32) -> (i32, i32) {
    %c0_i32 = arith.constant 0 : i32
    %c0_i32_0 = arith.constant 0 : i32
    %c0_i32_1 = arith.constant 0 : i32
    return %c0_i32, %c0_i32_0 : i32, i32
  }
  func.func @transform_2(%arg0: i32, %arg1: i32) -> (i32, i32) {
    %c0_i32 = arith.constant 0 : i32
    %c0_i32_0 = arith.constant 0 : i32
    %c0_i32_1 = arith.constant 0 : i32
    return %c0_i32, %c0_i32_0 : i32, i32
  }
  func.func @transform_3(%arg0: i32, %arg1: i32) -> (i32, i32, i32) {
    %c0_i32 = arith.constant 0 : i32
    %c0_i32_0 = arith.constant 0 : i32
    return %arg0, %c0_i32, %arg1 : i32, i32, i32
  }
}

</mosaic_0001>

<bundles_post_ra>
// kernel: single_conv_forward.1
= control target key start
LH: loop header
LB: loop body
LE: loop exit
PB: predicated region body
PF: predicated region fallthrough
CT: control target
= control target key end

     0   :  { %s514_s12 = smov 0   ;;  %s516_s13 = smov 0   ;;  %s579_s0 = inlined_call_operand.vmem [shape: f32[2,4,256], index: 0, kind: input, shape index: {}]   ;;  %s580_s1 = inlined_call_operand.vmem [shape: bf16[32,4], index: 1, kind: input, shape index: {}]   ;;  %s581_s2 = inlined_call_operand.vmem [shape: f32[32,1], index: 2, kind: input, shape index: {}]   ;;  %s582_s3 = inlined_call_operand.vmem [shape: f32[2,32,256], index: 3, kind: output, shape index: {}]  }
   0x1   :  { %s518_s14 = smov 0  }
   0x2 LB: > { %s25_s15 = sadd.s32 1, %s487_s13  ;;  %p417_p0 = scmp.ge.s32.totalorder %s491_s14, 1  ;;  %s491_s14 = sphi %s518_s14, %s13_s14   ;;  %s487_s13 = sphi %s516_s13, %s584_s13   ;;  %s483_s12 = sphi %s514_s12, %s583_s12  }
   0x3   : > { %p27_p1 = scmp.ge.s32.totalorder %s25_s15, 2  ;;  %p158_p2 = scmp.lt.s32.totalorder %s491_s14, 3 }
   0x5   : > { %s586_s15 = smov (%p27_p1, %s25_s15), 0  ;;  %p159_p3 = pnand %p417_p0, %p158_p2 }
   0x6   : > { %p191_p4 = scmp.lt.s32.totalorder (!%p159_p3), %s483_s12, 1 }
   0x7   : > { %162 = sbr.rel (%p159_p3) target bundleno = 176 (0xb0), region = 32 }
   0xc   : > { %v493_v0 = vmov 0   ;;  %v226_v1 = vld [vmem:[%s581_s2 + $0x10] sm:$0xff]  ;;  %v224_v2 = vld [vmem:[%s581_s2] sm:$0xff]  ;;  %s588_s12 = smov (!%p191_p4, %s483_s12), 1  ;;  %v227_v4 = vld [vmem:[%s581_s2 + $0x18] sm:$0xff]  ;;  %vm265_vm0 = vcmask 1041408  }
   0xd   : > { %468 = vset.pattern.permute.xlu1 %v493_v0  ;;  %467 = vset.pattern.permute.xlu0 %v493_v0  ;;  %s436_s20 = sshll.u32 %s588_s12, 3  ;;  %v225_v5 = vld [vmem:[%s581_s2 + $0x8] sm:$0xff]  ;;  %v438_v12 = vld [vmem:[%s580_s1] sm:$0xff]  ;;  %vm258_vm1 = vcmask 31744   ;;  %s437_s5 = sshll.u32 %s588_s12, 6 }
   0xe   : > { %240 = vperm.xlu1 %468, %v226_v1   ;;  %230 = vperm.xlu0 %467, %v224_v2   ;;  %s198_s23 = scalar_lea.vmem %s579_s0, %s436_s20  ;;  %v439_v13 = vld [vmem:[%s580_s1 + $0x8] sm:$0xff]  ;;  %s560_s8 = scalar_lea.vmem %s582_s3, %s437_s5 }
   0xf   : > { %v215_v3 = vld [vmem:[%s198_s23] sm:$0xff] }
  0x10   : > { %217 = vst [vmem:[#allocation1] ss:$2 sm:$0xff] %v215_v3 }
  0x16   : > { %245 = vperm.xlu1 %468, %v227_v4   ;;  %235 = vperm.xlu0 %467, %v225_v5  }
  0x17   : > { %v218_v6 = vld.sshfl [vmem:[#allocation1] sm:$0xff pattern:$0x75316420]  ;;  %v219_v7 = vld.sshfl [vmem:[#allocation1 + $0x8] sm:$0xff pattern:$0x75316420] }
  0x18   : > { %v222_v8 = vpack.c.bf16 %v218_v6, %v218_v6  ;;  %v223_v9 = vpack.c.bf16 %v219_v7, %v219_v7 }
  0x1a   : > { %v267_v10 = vsel %vm265_vm0, %v222_v8, 0  ;;  %v270_v11 = vsel %vm265_vm0, %v223_v9, 0 }
  0x1b   : > { %279 = vmatpush.bf16.msra.mxu0 %v267_v10  ;;  %440 = vmatpush.bf16.msra.mxu2 %v267_v10 }
  0x1c   : > { %298 = vmatpush.bf16.msra.mxu1 %v270_v11  ;;  %441 = vmatpush.bf16.msra.mxu3 %v270_v11 }
  0x1e   : > { %430 = vmatmul.msk.bf16.vlgmr.msra.gmra.mxu0 %vm258_vm1, %v438_v12  ;;  %431 = vmatmul.msk.bf16.vlgmr.msra.gmra.mxu2 %vm258_vm1, %v439_v13 }
  0x1f   : > { %432 = vmatmul.msk.bf16.vlgmr.msra.gmra.mxu1 %vm258_vm1, %v438_v12  ;;  %433 = vmatmul.msk.bf16.vlgmr.msra.gmra.mxu3 %vm258_vm1, %v439_v13 }
  0x80   : > { %v231_v14 = vpop.permute.xlu0 %230  ;;  %v241_v20 = vpop.permute.xlu1 %240 }
  0x88   : > { %v236_v25 = vpop.permute.xlu0 %235  ;;  %v246_v35 = vpop.permute.xlu1 %245 }
  0x9b   : > { %v281_v15 = vpop.f32.mrf.mxu0 }
  0x9c   : > { %v282_v16 = vadd.f32 %v281_v15, %v231_v14  ;;  %v300_v17 = vpop.f32.mrf.mxu1 }
  0x9d   : > { %v301_v18 = vadd.f32 %v300_v17, %v231_v14 }
  0x9e   : > { %v310_v19 = vmax.f32 %v282_v16, 0.0 }
  0x9f   : > { %v311_v21 = vmax.f32 %v301_v18, 0.0 }
  0xa0   : > { %318 = vst [vmem:[%s560_s8] sm:$0xff] %v310_v19 }
  0xa1   : > { %319 = vst [vmem:[%s560_s8 + $0x8] sm:$0xff] %v311_v21  ;;  %v286_v22 = vpop.f32.mrf.mxu2 }
  0xa2   : > { %v287_v23 = vadd.f32 %v286_v22, %v241_v20  ;;  %v305_v24 = vpop.f32.mrf.mxu3 }
  0xa3   : > { %v306_v26 = vadd.f32 %v305_v24, %v241_v20  ;;  %v283_v27 = vpop.f32.mrf.mxu0 }
  0xa4   : > { %v314_v28 = vmax.f32 %v287_v23, 0.0  ;;  %v284_v29 = vadd.f32 %v283_v27, %v236_v25  ;;  %v302_v30 = vpop.f32.mrf.mxu1 }
  0xa5   : > { %v315_v31 = vmax.f32 %v306_v26, 0.0  ;;  %v303_v32 = vadd.f32 %v302_v30, %v236_v25 }
  0xa6   : > { %322 = vst [vmem:[%s560_s8 + $0x20] sm:$0xff] %v314_v28  ;;  %v312_v33 = vmax.f32 %v284_v29, 0.0 }
  0xa7   : > { %323 = vst [vmem:[%s560_s8 + $0x28] sm:$0xff] %v315_v31  ;;  %v313_v34 = vmax.f32 %v303_v32, 0.0 }
  0xa8   : > { %320 = vst [vmem:[%s560_s8 + $0x10] sm:$0xff] %v312_v33 }
  0xa9   : > { %321 = vst [vmem:[%s560_s8 + $0x18] sm:$0xff] %v313_v34  ;;  %v288_v36 = vpop.f32.mrf.mxu2 }
  0xaa   : > { %v289_v37 = vadd.f32 %v288_v36, %v246_v35  ;;  %v307_v38 = vpop.f32.mrf.mxu3 }
  0xab   : > { %v308_v39 = vadd.f32 %v307_v38, %v246_v35 }
  0xac   : > { %v316_v40 = vmax.f32 %v289_v37, 0.0 }
  0xad   : > { %v317_v41 = vmax.f32 %v308_v39, 0.0 }
  0xae   : > { %324 = vst [vmem:[%s560_s8 + $0x30] sm:$0xff] %v316_v40 }
  0xaf   : > { %325 = vst [vmem:[%s560_s8 + $0x38] sm:$0xff] %v317_v41 }
  0xb0 PF: > { %s13_s14 = sadd.s32 1, %s491_s14   ;;  %s583_s12 = smov %s487_s13 }
  0xb1   : > { %p10_p5 = scmp.ge.s32.totalorder %s13_s14, 4   ;;  %s584_s13 = smov %s586_s15 }
  0xb3   :  { %12 = sbr.rel (!%p10_p5) target bundleno = 2 (0x2), region = 62 }

</bundles_post_ra>
